<compile_context>
chip_gen: v7x
topology: tpu7x:2x2x1
jax: 0.10.0
libtpu: 0.0.40
codegen_flags: <defaults>
</compile_context>

<pallas_src>
import math
import functools

import jax
import jax.numpy as jnp
from jax import lax
from jax.experimental import pallas as pl
from jax.experimental.pallas import tpu as pltpu


# --------------------------------------------------------------------------- helpers
def _largest_tile(n, cap):
    """Largest divisor of n that is a multiple of 8 and <= cap; falls back to n."""
    best = None
    upper = min(n, cap)
    for t in range(8, upper + 1, 8):
        if n % t == 0:
            best = t
    return best if best is not None else n


def _pick_head_group(num_heads, head_dim):
    """Smallest group size G dividing num_heads with G*head_dim lane-dense
    (multiple of 128); fall back to all heads in one group (G*D == C)."""
    for g in range(1, num_heads + 1):
        if num_heads % g == 0 and (g * head_dim) % 128 == 0:
            return g
    return num_heads


def _vmem_limit(est_bytes):
    # Raise the scoped-VMEM limit when the tile footprint needs it (v5e default is
    # only 16 MiB); cap at 64 MiB so the request stays within v7x physical VMEM.
    return int(min(64 * 2**20, max(32 * 2**20, 2 * est_bytes)))


# --------------------------------------------------------------------------- pass 1
def qkv_proj_kernel(x_ref, wt_ref, b_ref, q_ref, k_ref, v_ref):
    """Fused QKV projection: (TM, C) @ (C, 3C) + bias, split into q/k/v outputs."""
    C = q_ref.shape[-1]
    y = jnp.dot(x_ref[...], wt_ref[...], preferred_element_type=jnp.float32)
    y = (y + b_ref[...]).astype(q_ref.dtype)          # bias kept in f32 for the add
    q_ref[...] = y[:, :C]
    k_ref[...] = y[:, C:2 * C]
    v_ref[...] = y[:, 2 * C:]


# --------------------------------------------------------------------------- pass 2
def attn_kernel(q_ref, k_ref, v_ref, wp_ref, bp_ref, o_ref, acc_ref, *,
                group, head_dim):
    """Attention for one (batch, q-tile, head-group) step + folded out-projection.

    Grid: (B, nq, n_groups); the head-group axis is innermost ("arbitrary") and the
    output block stays resident across it, accumulated in an f32 VMEM scratch.
    """
    g = pl.program_id(2)

    @pl.when(g == 0)
    def _init():
        acc_ref[...] = jnp.zeros_like(acc_ref)

    q = q_ref[...]            # (TQ, G*D)  — sqrt(D) scale pre-folded into q weights
    k = k_ref[...]            # (T,  G*D)
    v = v_ref[...]            # (T,  G*D)
    dt = q.dtype
    D = head_dim
    GD = group * D

    outs = []
    for hh in range(group):                       # static unrolled loop, G is small
        sl = slice(hh * D, (hh + 1) * D)
        # Scores: contract q and k on head_dim (no K transpose), f32 accumulation.
        s = lax.dot_general(q[:, sl], k[:, sl], (((1,), (1,)), ((), ())),
                            preferred_element_type=jnp.float32)        # (TQ, T) f32
        m = jnp.max(s, axis=-1, keepdims=True)
        p = jnp.exp(s - m)
        l = jnp.sum(p, axis=-1, keepdims=True)
        pv = jnp.dot(p.astype(dt), v[:, sl],
                     preferred_element_type=jnp.float32)                # (TQ, D) f32
        outs.append(pv * (1.0 / l))               # exact softmax normalization

    o_grp = outs[0] if group == 1 else jnp.concatenate(outs, axis=-1)   # (TQ, GD) f32

    # Output projection folded into the head-group reduction with full GD depth:
    #   proj(concat_h o_h) = sum_g  o_grp_g @ Wproj.T[g*GD:(g+1)*GD, :]
    # Wproj.T is resident in VMEM (constant index_map); slice this group's rows.
    wp = wp_ref[pl.ds(pl.multiple_of(g * GD, GD), GD), :]               # (GD, C)
    acc_ref[...] += jnp.dot(o_grp.astype(dt), wp,
                            preferred_element_type=jnp.float32)

    @pl.when(g == pl.num_programs(2) - 1)
    def _finalize():
        o_ref[...] = (acc_ref[...] + bp_ref[...]).astype(o_ref.dtype)


# --------------------------------------------------------------------------- wrapper
def multi_head_attention(x, wqkv, bqkv, wproj, bproj, *, num_heads, q_tile=None):
    B, T, C = x.shape
    H = num_heads
    assert C % H == 0, "dim must be divisible by num_heads"
    D = C // H
    dt = x.dtype
    dtsz = jnp.dtype(dt).itemsize

    # ---- one-time parameter re-layout (wrapper, not in-kernel) ----
    # Fold the module's `attention * sqrt(head_dim)` scale into the q rows of the
    # fused QKV weight/bias (zero in-kernel cost, exact in f32).
    scale = math.sqrt(float(D))
    wqkv_f = wqkv.astype(jnp.float32).at[:C].multiply(scale)
    bqkv_f = bqkv.astype(jnp.float32).at[:C].multiply(scale)
    wt = jnp.transpose(wqkv_f).astype(dt)             # (C, 3C):  y = x @ wt
    b3 = bqkv_f.reshape(1, 3 * C)                     # f32 bias (kept f32)
    wp_t = jnp.transpose(wproj).astype(dt)            # (C, C):   out = o @ wp_t
    bp = bproj.astype(jnp.float32).reshape(1, C)      # f32 bias (kept f32)

    # ---- tiling ----
    TM = _largest_tile(T, 256)                        # pass-1 row tile
    nt = T // TM
    if q_tile is None:
        cap = 512
        if B == 1 and T >= 16:
            cap = min(cap, max(8, T // 2))            # keep >=2 parallel q-tiles (v7x 2-TC)
        TQ = _largest_tile(T, cap)
    else:
        TQ = q_tile
    assert T % TQ == 0, "T must be divisible by q_tile"
    nq = T // TQ

    G = _pick_head_group(H, D)                        # heads per grid step
    GD = G * D
    ng = H // G

    # ---------------- pass 1: fused QKV projection ----------------
    # x (B,T,C) -> q, k, v (B,T,C), head-contiguous last dim (PyTorch layout).
    # Weight/bias specs have constant index_maps, so they are DMA'd once and stay
    # resident across all grid steps. x is read exactly once.
    est1 = (2 * TM * C * dtsz            # x block (double-buffered)
            + 2 * C * 3 * C * dtsz       # fused weight (resident, 2 bufs)
            + 2 * 3 * C * 4              # bias
            + 2 * 3 * TM * C * dtsz      # q/k/v output blocks
            + TM * 3 * C * 4)            # f32 matmul result
    q, k, v = pl.pallas_call(
        qkv_proj_kernel,
        out_shape=(jax.ShapeDtypeStruct((B, T, C), dt),
                   jax.ShapeDtypeStruct((B, T, C), dt),
                   jax.ShapeDtypeStruct((B, T, C), dt)),
        grid_spec=pltpu.PrefetchScalarGridSpec(
            num_scalar_prefetch=0,
            grid=(B, nt),
            in_specs=[
                pl.BlockSpec((None, TM, C), lambda b, t: (b, t, 0)),   # x rows
                pl.BlockSpec((C, 3 * C),    lambda b, t: (0, 0)),      # Wqkv^T (resident)
                pl.BlockSpec((1, 3 * C),    lambda b, t: (0, 0)),      # bias f32 (resident)
            ],
            out_specs=[
                pl.BlockSpec((None, TM, C), lambda b, t: (b, t, 0)),
                pl.BlockSpec((None, TM, C), lambda b, t: (b, t, 0)),
                pl.BlockSpec((None, TM, C), lambda b, t: (b, t, 0)),
            ],
        ),
        compiler_params=pltpu.CompilerParams(
            dimension_semantics=("parallel", "parallel"),
            vmem_limit_bytes=_vmem_limit(est1),
        ),
    )(x, wt, b3)

    # ---------------- pass 2: attention + folded output projection ----------------
    est2 = (2 * TQ * GD * dtsz + 2 * 2 * T * GD * dtsz   # q, k, v blocks (double-buffered)
            + 2 * C * C * dtsz + 2 * C * 4               # Wproj^T, bproj (resident)
            + 2 * TQ * C * dtsz + TQ * C * 4             # output block + f32 accumulator
            + 2 * TQ * T * 4 + 2 * TQ * GD * 4)          # score / head-output temporaries
    kernel = functools.partial(attn_kernel, group=G, head_dim=D)
    out = pl.pallas_call(
        kernel,
        out_shape=jax.ShapeDtypeStruct((B, T, C), dt),
        grid_spec=pltpu.PrefetchScalarGridSpec(
            num_scalar_prefetch=0,
            grid=(B, nq, ng),                            # head-group innermost (reduction)
            in_specs=[
                pl.BlockSpec((None, TQ, GD), lambda b, qt, g: (b, qt, g)),  # q rows, group g
                pl.BlockSpec((None, T, GD),  lambda b, qt, g: (b, 0, g)),   # k, group g
                pl.BlockSpec((None, T, GD),  lambda b, qt, g: (b, 0, g)),   # v, group g
                pl.BlockSpec((C, C),         lambda b, qt, g: (0, 0)),      # Wproj^T (resident)
                pl.BlockSpec((1, C),         lambda b, qt, g: (0, 0)),      # bproj f32
            ],
            out_specs=pl.BlockSpec((None, TQ, C), lambda b, qt, g: (b, qt, 0)),
            scratch_shapes=[pltpu.VMEM((TQ, C), jnp.float32)],              # head reduction acc
        ),
        compiler_params=pltpu.CompilerParams(
            dimension_semantics=("parallel", "parallel", "arbitrary"),
            vmem_limit_bytes=_vmem_limit(est2),
        ),
    )(q, k, v, wp_t, bp)
    return out


# --------------------------------------------------------------------------- reference
def reference_mha(x, wqkv, bqkv, wproj, bproj, *, num_heads):
    """Pure-JAX reference mirroring the PyTorch forward (eval mode)."""
    B, T, C = x.shape
    D = C // num_heads
    qkv = jnp.einsum('btc,oc->bto', x, wqkv) + bqkv            # (B, T, 3C)
    q, k, v = jnp.split(qkv, 3, axis=2)
    q = q.reshape(B, T, num_heads, D).transpose(0, 2, 1, 3)
    k = k.reshape(B, T, num_heads, D).transpose(0, 2, 1, 3)
    v = v.reshape(B, T, num_heads, D).transpose(0, 2, 1, 3)
    att = jnp.einsum('bhqd,bhkd->bhqk', q, k) * math.sqrt(D)
    att = jax.nn.softmax(att, axis=-1)
    out = jnp.einsum('bhqk,bhkd->bhqd', att, v)
    out = out.transpose(0, 2, 1, 3).reshape(B, T, C)
    return jnp.einsum('btc,oc->bto', out, wproj) + bproj


if __name__ == "__main__":
    B, T, C = 2, 8, 64
    num_heads = 4

    key = jax.random.PRNGKey(0)
    kx, kw1, kb1, kw2, kb2 = jax.random.split(key, 5)

    # Deterministic parameter init (PyTorch nn.Linear-style uniform bounds).
    bound = 1.0 / math.sqrt(C)
    x = jax.random.normal(kx, (B, T, C), dtype=jnp.float32)
    wqkv = jax.random.uniform(kw1, (3 * C, C), minval=-bound, maxval=bound,
                              dtype=jnp.float32)
    bqkv = jax.random.uniform(kb1, (3 * C,), minval=-bound, maxval=bound,
                              dtype=jnp.float32)
    wproj = jax.random.uniform(kw2, (C, C), minval=-bound, maxval=bound,
                               dtype=jnp.float32)
    bproj = jax.random.uniform(kb2, (C,), minval=-bound, maxval=bound,
                               dtype=jnp.float32)

    ref = reference_mha(x, wqkv, bqkv, wproj, bproj, num_heads=num_heads)

    # f32 path.
    out = multi_head_attention(x, wqkv, bqkv, wproj, bproj, num_heads=num_heads)
    out = jax.block_until_ready(out)
    assert jnp.allclose(out, ref, atol=2e-3, rtol=2e-3), (
        f"f32 max abs err = {jnp.max(jnp.abs(out - ref))}")

    # bf16 fast path (MXU operands in bf16, f32 accumulation & biases) — loose check.
    out_bf16 = multi_head_attention(x.astype(jnp.bfloat16), wqkv, bqkv, wproj, bproj,
                                    num_heads=num_heads)
    out_bf16 = jax.block_until_ready(out_bf16)
    assert jnp.allclose(out_bf16.astype(jnp.float32), ref, atol=1e-1, rtol=1e-1), (
        f"bf16 max abs err = {jnp.max(jnp.abs(out_bf16.astype(jnp.float32) - ref))}")

    print("KERNEL_OK")
</pallas_src>

<mosaic_0001>
module attributes {stable_mosaic.version = 11 : i64} {
  func.func @qkv_proj_kernel(%arg0: i32, %arg1: i32, %arg2: memref<1x8x64xf32, #tpu.memory_space<vmem>>, %arg3: memref<64x192xf32, #tpu.memory_space<vmem>>, %arg4: memref<1x192xf32, #tpu.memory_space<vmem>>, %arg5: memref<1x8x64xf32, #tpu.memory_space<vmem>>, %arg6: memref<1x8x64xf32, #tpu.memory_space<vmem>>, %arg7: memref<1x8x64xf32, #tpu.memory_space<vmem>>) attributes {dimension_semantics = [#tpu.dimension_semantics<parallel>, #tpu.dimension_semantics<parallel>], iteration_bounds = array<i64: 2, 1>, scalar_prefetch = 0 : i64, scratch_operands = 0 : i64, tpu.core_type = #tpu.core_type<tc>, window_params = [{transform_indices = @transform_0, window_bounds = array<i64: 1, 8, 64>}, {pipeline_mode = #tpu.pipeline_mode<synchronous>, transform_indices = @transform_1, window_bounds = array<i64: 64, 192>}, {pipeline_mode = #tpu.pipeline_mode<synchronous>, transform_indices = @transform_2, window_bounds = array<i64: 1, 192>}, {transform_indices = @transform_3, window_bounds = array<i64: 1, 8, 64>}, {transform_indices = @transform_4, window_bounds = array<i64: 1, 8, 64>}, {transform_indices = @transform_5, window_bounds = array<i64: 1, 8, 64>}]} {
    %c0 = arith.constant 0 : index
    %c0_0 = arith.constant 0 : index
    %c0_1 = arith.constant 0 : index
    %0 = vector.load %arg2[%c0, %c0_0, %c0_1] : memref<1x8x64xf32, #tpu.memory_space<vmem>>, vector<1x8x64xf32>
    %1 = vector.shape_cast %0 : vector<1x8x64xf32> to vector<8x64xf32>
    %c0_2 = arith.constant 0 : index
    %c0_3 = arith.constant 0 : index
    %2 = vector.load %arg3[%c0_2, %c0_3] : memref<64x192xf32, #tpu.memory_space<vmem>>, vector<64x192xf32>
    %cst = arith.constant dense<0.000000e+00> : vector<8x192xf32>
    %3 = tpu.matmul %1, %2, %cst {dimension_numbers = #tpu.dot_dimension_numbers<[1], [0], [0], [1], [0, 0, 1, 1], [], []>} : vector<8x64xf32>, vector<64x192xf32>, vector<8x192xf32> -> vector<8x192xf32>
    %c0_4 = arith.constant 0 : index
    %c0_5 = arith.constant 0 : index
    %4 = vector.load %arg4[%c0_4, %c0_5] : memref<1x192xf32, #tpu.memory_space<vmem>>, vector<1x192xf32>
    %5 = vector.broadcast %4 : vector<1x192xf32> to vector<8x192xf32>
    %6 = arith.addf %3, %5 : vector<8x192xf32>
    %7 = vector.extract_strided_slice %6 {offsets = [0, 0], sizes = [8, 64], strides = [1, 1]} : vector<8x192xf32> to vector<8x64xf32>
    %c0_6 = arith.constant 0 : index
    %c0_7 = arith.constant 0 : index
    %c0_8 = arith.constant 0 : index
    %8 = vector.load %arg5[%c0_6, %c0_7, %c0_8] : memref<1x8x64xf32, #tpu.memory_space<vmem>>, vector<1x8x64xf32>
    %9 = vector.shape_cast %8 : vector<1x8x64xf32> to vector<8x64xf32>
    %10 = vector.shape_cast %7 : vector<8x64xf32> to vector<1x8x64xf32>
    tpu.vector_store %arg5[%c0_6, %c0_7, %c0_8], %10 {strides = array<i32>} : memref<1x8x64xf32, #tpu.memory_space<vmem>>, vector<1x8x64xf32>,
    %11 = vector.extract_strided_slice %6 {offsets = [0, 64], sizes = [8, 64], strides = [1, 1]} : vector<8x192xf32> to vector<8x64xf32>
    %c0_9 = arith.constant 0 : index
    %c0_10 = arith.constant 0 : index
    %c0_11 = arith.constant 0 : index
    %12 = vector.load %arg6[%c0_9, %c0_10, %c0_11] : memref<1x8x64xf32, #tpu.memory_space<vmem>>, vector<1x8x64xf32>
    %13 = vector.shape_cast %12 : vector<1x8x64xf32> to vector<8x64xf32>
    %14 = vector.shape_cast %11 : vector<8x64xf32> to vector<1x8x64xf32>
    tpu.vector_store %arg6[%c0_9, %c0_10, %c0_11], %14 {strides = array<i32>} : memref<1x8x64xf32, #tpu.memory_space<vmem>>, vector<1x8x64xf32>,
    %15 = vector.extract_strided_slice %6 {offsets = [0, 128], sizes = [8, 64], strides = [1, 1]} : vector<8x192xf32> to vector<8x64xf32>
    %c0_12 = arith.constant 0 : index
    %c0_13 = arith.constant 0 : index
    %c0_14 = arith.constant 0 : index
    %16 = vector.load %arg7[%c0_12, %c0_13, %c0_14] : memref<1x8x64xf32, #tpu.memory_space<vmem>>, vector<1x8x64xf32>
    %17 = vector.shape_cast %16 : vector<1x8x64xf32> to vector<8x64xf32>
    %18 = vector.shape_cast %15 : vector<8x64xf32> to vector<1x8x64xf32>
    tpu.vector_store %arg7[%c0_12, %c0_13, %c0_14], %18 {strides = array<i32>} : memref<1x8x64xf32, #tpu.memory_space<vmem>>, vector<1x8x64xf32>,
    return
  }
  func.func @transform_0(%arg0: i32, %arg1: i32) -> (i32, i32, i32) {
    %c0_i32 = arith.constant 0 : i32
    %c0_i32_0 = arith.constant 0 : i32
    return %arg0, %arg1, %c0_i32 : i32, i32, i32
  }
  func.func @transform_1(%arg0: i32, %arg1: i32) -> (i32, i32) {
    %c0_i32 = arith.constant 0 : i32
    %c0_i32_0 = arith.constant 0 : i32
    %c0_i32_1 = arith.constant 0 : i32
    return %c0_i32, %c0_i32_0 : i32, i32
  }
  func.func @transform_2(%arg0: i32, %arg1: i32) -> (i32, i32) {
    %c0_i32 = arith.constant 0 : i32
    %c0_i32_0 = arith.constant 0 : i32
    %c0_i32_1 = arith.constant 0 : i32
    return %c0_i32, %c0_i32_0 : i32, i32
  }
  func.func @transform_3(%arg0: i32, %arg1: i32) -> (i32, i32, i32) {
    %c0_i32 = arith.constant 0 : i32
    %c0_i32_0 = arith.constant 0 : i32
    return %arg0, %arg1, %c0_i32 : i32, i32, i32
  }
  func.func @transform_4(%arg0: i32, %arg1: i32) -> (i32, i32, i32) {
    %c0_i32 = arith.constant 0 : i32
    %c0_i32_0 = arith.constant 0 : i32
    return %arg0, %arg1, %c0_i32 : i32, i32, i32
  }
  func.func @transform_5(%arg0: i32, %arg1: i32) -> (i32, i32, i32) {
    %c0_i32 = arith.constant 0 : i32
    %c0_i32_0 = arith.constant 0 : i32
    return %arg0, %arg1, %c0_i32 : i32, i32, i32
  }
}

</mosaic_0001>

<bundles_post_ra>
// kernel: tpu_custom_call.1
= control target key start
LH: loop header
LB: loop body
LE: loop exit
PB: predicated region body
PF: predicated region fallthrough
CT: control target
= control target key end

     0   :  { %11 = vsyncpa [#allocation3], 0  ;;  %s1276_s0 = inlined_call_operand.hbm [shape: f32[2,8,64], index: 0, kind: input, shape index: {}]   ;;  %s1277_s1 = inlined_call_operand.hbm [shape: f32[64,192], index: 1, kind: input, shape index: {}]   ;;  %s1278_s2 = inlined_call_operand.vmem [shape: f32[1,192], index: 2, kind: input, shape index: {}]   ;;  %s1279_s3 = inlined_call_operand.hbm [shape: f32[2,8,64], index: 3, kind: output, shape index: {0}]   ;;  %s1280_s4 = inlined_call_operand.hbm [shape: f32[2,8,64], index: 4, kind: output, shape index: {1}]   ;;  %s1281_s5 = inlined_call_operand.hbm [shape: f32[2,8,64], index: 5, kind: output, shape index: {2}]  }
   0x1   :  { %13 = vsyncpa [#allocation3 + $0x1], 0 }
   0x2   :  { %14 = vsyncpa [#allocation6], 0 }
   0x3   :  { %15 = vsyncpa [#allocation4], 0 }
   0x4   :  { %17 = vsyncpa [#allocation4 + $0x1], 0 }
   0x5   :  { %18 = vsyncpa [#allocation9], 0 }
   0x6   :  { %20 = vsyncpa [#allocation9 + $0x1], 0  ;;  %s981_s18 = smov 0   ;;  %s983_s19 = smov 0  }
   0x7   :  { %s985_s20 = smov 0   ;;  %s987_s21 = smov 0  }
   0x8   :  { %s989_s22 = smov 0   ;;  %s991_s23 = smov 0  }
   0x9 LB: > { %s1012_s24 = sadd.s32 4294967295, %s940_s23   ;;  %s1285_s25 = sadd.s32 4294967294, %s940_s23   ;;  %s940_s23 = sphi %s991_s23, %s26_s23   ;;  %s936_s22 = sphi %s989_s22, %s1305_s22   ;;  %s932_s21 = sphi %s987_s21, %s1304_s21   ;;  %s928_s20 = sphi %s985_s20, %s1303_s20   ;;  %s924_s19 = sphi %s983_s19, %s1302_s19   ;;  %s920_s18 = sphi %s981_s18, %s1301_s18  }
   0xa   : > { %p60_p0 = scmp.ne.s32.totalorder %s924_s19, %s920_s18  ;;  %p1282_p1 = scmp.eq.s32.totalorder %s1012_s24, 0 }
   0xb   : > { %p134_p3 = scmp.eq.s32.totalorder %s1285_s25, 1  ;;  %p613_p5 = scmp.ge.s32.totalorder %s940_s23, 1 }
   0xc   : > { %p1023_p4 = por %p1282_p1, %p60_p0  ;;  %p197_p7 = scmp.lt.s32.totalorder %s940_s23, 3 }
   0xd   : > { %p1028_p6 = por %p134_p3, %p60_p0  ;;  %s942_s29 = smov [#allocation5]  }
   0xe   : > { %s1286_s26 = scalar_select %p1023_p4, 1, 0 }
   0xf   : > { %s1287_s27 = scalar_select %p1028_p6, 1, 0 }
  0x10   : > { %p1033_p8 = pnand %p613_p5, %p197_p7  ;;  %s209_s30 = sshll.u32 %s942_s29, 4  ;;  %s210_s30 = int_to_ptr.vmem [resolvable:$true] %s209_s30 }
  0x11   : > { %s38_s7 = sadd.s32 1, %s936_s22  ;;  %s736_s10 = scalar_lea.hbm %s1277_s1, 2048 }
  0x12   : > { %s1288_s28 = scalar_select %p1033_p8, 1, 0 }
  0x13   : > { %p661_p9 = pneg %p1033_p8  ;;  %p737_p12 = scmp.ne.s32.totalorder %s1277_s1, %s736_s10 }
  0x14   : > { %p743_p5 = scmp.lt.u32.totalorder %s736_s10, %s1277_s1 }
  0x15   : > { %p1042_p11 = pnand %p661_p9, %p1282_p1 }
  0x17   : > { %p738_p13 = pneg %p1042_p11 }
  0x19   : > { %p739_p0 = pnand %p738_p13, %p737_p12 }
  0x1b   : > { %p740_p3 = pneg %p739_p0 }
  0x1d   : > { %p745_p7 = pnand %p743_p5, %p740_p3 }
  0x1f   : > { %748 = shalt.err (!%p745_p7)
}
  0x20   : > { %s749_s15 = scalar_lea.vmem %s210_s30, 2048  ;;  %p757_p2 = scmp.lt.s32.totalorder %s210_s30, %s210_s30 }
  0x21   : > { %p750_p9 = scmp.ne.s32.totalorder %s210_s30, %s749_s15  ;;  %p758_p6 = scmp.lt.s32.totalorder %s749_s15, %s749_s15 }
  0x23   : > { %p752_p10 = pnand %p750_p9, %p738_p13  ;;  %p759_p4 = por %p758_p6, %p757_p2 }
  0x25   : > { %p753_p1 = pneg %p752_p10 }
  0x27   : > { %p760_p8 = pnand %p759_p4, %p753_p1 }
  0x29   : > { %763 = shalt.err (!%p760_p8)
}
  0x2a   : > { %s943_s16 = smov 256   ;;  %s944_s17 = smov 16  }
  0x2b   : > { %664 = dma.hbm_to_vmem [thread:$0]  (!%p1042_p11), %s1277_s1, 2048, %s210_s30, [#allocation6], %s943_s16, %s943_s16, %s944_s17  }
  0x2c   : > { %p40_p1 = scmp.ge.s32.totalorder %s38_s7, 2  ;;  %s47_s9 = sadd.s32 1, %s928_s20 }
  0x2d   : > { %p54_p2 = scmp.ne.s32.totalorder %s928_s20, %s924_s19  ;;  %p55_p4 = scmp.eq.s32.totalorder %s940_s23, 0 }
  0x2e   : > { %s1307_s7 = smov (%p40_p1, %s38_s7), 0  ;;  %p1291_p8 = scmp.eq.s32.totalorder %s1012_s24, 1 }
  0x2f   : > { %p1069_p6 = por %p55_p4, %p54_p2  ;;  %s42_s6 = ssub.s32 %s936_s22, %s1307_s7 }
  0x30   : > { %p1075_p10 = por %p1291_p8, %p54_p2  ;;  %p680_p12 = scmp.lt.s32.totalorder %s940_s23, 2 }
  0x31   : > { %p45_p11 = scmp.eq.s32.totalorder %s42_s6, 0  ;;  %s226_s30 = sand.u32 1, %s928_s20  }
  0x32   : > { %s616_s12 = sshll.u32 %s226_s30, 3  ;;  %s617_s14 = sshll.u32 %s936_s22, 7 }
  0x33   : > { %s1084_s13 = scalar_select %p45_p11, %s928_s20, %s47_s9  }
  0x34   : > { %s1090_s17 = scalar_lea.hbm %s1276_s0, %s617_s14  ;;  %s230_s29 = scalar_lea.vmem [#allocation2], %s616_s12 }
  0x35   : > { %s238_s8 = sshll.u32 %s230_s29, 4  ;;  %p1096_p13 = pnand %p680_p12, %p1069_p6  ;;  %s1092_s8 = int_to_ptr.vmem [resolvable:$true] %s238_s8 }
  0x36   : > { %s227_s9 = scalar_lea.sflag [#allocation3], %s226_s30  ;;  %s764_s25 = scalar_lea.hbm %s1090_s17, 128 }
  0x37   : > { %p765_p0 = scmp.ne.s32.totalorder %s1090_s17, %s764_s25  ;;  %p766_p3 = pneg %p1096_p13 }
  0x38   : > { %s769_s15 = scalar_lea.hbm %s1276_s0, 256  ;;  %p770_p9 = scmp.lt.u32.totalorder %s1090_s17, %s1276_s0 }
  0x39   : > { %p767_p5 = pnand %p766_p3, %p765_p0  ;;  %p771_p1 = scmp.lt.u32.totalorder %s769_s15, %s764_s25 }
  0x3a   : > { %p773_p4 = scmp.lt.u32.totalorder %s764_s25, %s1090_s17 }
  0x3b   : > { %p768_p7 = pneg %p767_p5  ;;  %p772_p2 = por %p771_p1, %p770_p9 }
  0x3d   : > { %p774_p6 = por %p773_p4, %p772_p2 }
  0x3f   : > { %p775_p8 = pnand %p774_p6, %p768_p7 }
  0x41   : > { %778 = shalt.err (!%p775_p8)
}
  0x42   : > { %s779_s30 = scalar_lea.vmem %s1092_s8, 128  ;;  %s945_s29 = smov [#allocation2]  }
  0x43   : > { %p780_p12 = scmp.ne.s32.totalorder %s1092_s8, %s779_s30  ;;  %s784_s12 = sshll.u32 %s945_s29, 4  ;;  %s785_s12 = int_to_ptr.vmem [resolvable:$false] %s784_s12 }
  0x44   : > { %s786_s14 = scalar_lea.vmem %s785_s12, 256  ;;  %p787_p5 = scmp.lt.s32.totalorder %s1092_s8, %s785_s12 }
  0x45   : > { %p782_p11 = pnand %p780_p12, %p766_p3  ;;  %p788_p9 = scmp.lt.s32.totalorder %s786_s14, %s779_s30 }
  0x47   : > { %p783_p0 = pneg %p782_p11  ;;  %p789_p1 = por %p788_p9, %p787_p5 }
  0x49   : > { %p790_p2 = pnand %p789_p1, %p783_p0 }
  0x4b   : > { %793 = shalt.err (!%p790_p2)
}
  0x4c   : > { %668 = dma.hbm_to_vmem [thread:$0]  (!%p1096_p13), %s1090_s17, 128, %s1092_s8, %s227_s9  }
  0x4d   : > { %p1294_p7 = scmp.ne.s32.totalorder %s1288_s28, 0 }
  0x4e   : > { %s1128_s25 = sand.u32 (!%p1294_p7), 1, %s924_s19   ;;  %p1295_p3 = scmp.ne.s32.totalorder (!%p1294_p7), %s1286_s26, 0 }
  0x4f   : > { %247 = sbr.rel (%p1294_p7) target bundleno = 474 (0x1da), region = 32  ;;  %s1131_s15 = sshll.u32 (!%p1294_p7), %s1128_s25, 3 }
  0x50   : > { %s250_s10 = scalar_lea.sflag (!%p1294_p7), [#allocation3], %s1128_s25  ;;  %s253_s16 = scalar_lea.vmem (!%p1294_p7), [#allocation2], %s1131_s15 }
  0x56   : > { %903 = dma.done.wait (%p1295_p3), %s250_s10, 128  }
  0x57   : > { %905 = vsyncadd (%p1295_p3), %s250_s10, 4294967168  ;;  %p1296_p13 = scmp.eq.s32.totalorder %s1012_s24, 0 }
  0x59   : > { %907 = dma.done.wait (%p1296_p13), [#allocation6], 2048   ;;  %p1297_p4 = pmov %p1296_p13 }
  0x5a   : > { %v946_v0 = vmov 0.0   ;;  %v296_v1 = vld [vmem:[#allocation5 + $0x8] sm:$0xff]  ;;  %v298_v2 = vld [vmem:[#allocation5 + $0x18] sm:$0xff]  ;;  %v295_v3 = vld [vmem:[#allocation5] sm:$0xff]  ;;  %vm323_vm0 = vcmask 523264   ;;  %v313_v26 = vlaneseq  ;;  %s1150_s17 = sshll.u32 %s932_s21, 7 }
  0x5b   : > { %909 = vsyncadd (%p1297_p4), [#allocation6], 4294965248  ;;  %391 = vmatprep.mubr.f32.mxu0 %v946_v0  ;;  %v633_v4 = vpack.c.bf16 %v298_v2, %v296_v1  ;;  %v297_v5 = vld [vmem:[#allocation5 + $0x10] sm:$0xff]  ;;  %v300_v6 = vld [vmem:[#allocation5 + $0x28] sm:$0xff]  ;;  %s279_s8 = scalar_lea.vmem [#allocation7], %s1131_s15  ;;  %s1157_s29 = scalar_lea.hbm %s1279_s3, %s1150_s17 }
  0x5c   : > { %v302_v7 = vld [vmem:[#allocation5 + $0x38] sm:$0xff]  ;;  %v635_v8 = vpack.c.bf16 %v297_v5, %v295_v3  ;;  %v299_v10 = vld [vmem:[#allocation5 + $0x20] sm:$0xff]  ;;  %v301_v11 = vld [vmem:[#allocation5 + $0x30] sm:$0xff]  ;;  %v314_v27 = vshrl.u32 %v313_v26, 7  ;;  %s430_s6 = sshll.u32 %s279_s8, 4  ;;  %s947_s12 = smov 64   ;;  %s1159_s6 = int_to_ptr.vmem [resolvable:$true] %s430_s6 }
  0x5d   : > { %v637_v9 = vpack.c.bf16 %v302_v7, %v300_v6  ;;  %v304_v12 = vld [vmem:[#allocation5 + $0x48] sm:$0xff]  ;;  %634 = vmatprep.subr.bf16.mxu0 %v633_v4  ;;  %v306_v13 = vld [vmem:[#allocation5 + $0x58] sm:$0xff]  ;;  %v639_v14 = vpack.c.bf16 %v301_v11, %v299_v10  ;;  %v303_v16 = vld [vmem:[#allocation5 + $0x40] sm:$0xff]  ;;  %s406_s21 = scalar_lea.sflag [#allocation4], %s1128_s25  ;;  %s794_s14 = scalar_lea.vmem %s1159_s6, 128 }
  0x5e   : > { %636 = vmatpush1.bf16.msra.mxu0 %v635_v8  ;;  %v641_v15 = vpack.c.bf16 %v306_v13, %v304_v12  ;;  %v305_v17 = vld [vmem:[#allocation5 + $0x50] sm:$0xff]  ;;  %v308_v18 = vld [vmem:[#allocation5 + $0x68] sm:$0xff]  ;;  %v310_v19 = vld [vmem:[#allocation5 + $0x78] sm:$0xff]  ;;  %v315_v28 = vsub.s32 0, %v314_v27  ;;  %v319_v30 = vsub.s32 1, %v314_v27  ;;  %p795_p6 = scmp.ne.s32.totalorder %s1159_s6, %s794_s14  ;;  %s948_s10 = smov [#allocation7]  }
  0x5f   : > { %638 = vmatprep.subr.bf16.mxu0 %v637_v9  ;;  %v643_v20 = vpack.c.bf16 %v305_v17, %v303_v16  ;;  %v645_v21 = vpack.c.bf16 %v310_v19, %v308_v18  ;;  %v307_v22 = vld [vmem:[#allocation5 + $0x60] sm:$0xff]  ;;  %v309_v23 = vld [vmem:[#allocation5 + $0x70] sm:$0xff] }
  0x60   : > { %v647_v24 = vpack.c.bf16 %v309_v23, %v307_v22  ;;  %v294_v25 = vld [vmem:[%s253_s16] sm:$0xff]  ;;  %p796_p8 = pnand %p795_p6, %p1075_p10  ;;  %s798_s16 = sshll.u32 %s948_s10, 4  ;;  %s799_s16 = int_to_ptr.vmem [resolvable:$false] %s798_s16 }
  0x61   : > { %v311_v29 = vld [vmem:[%s1278_s2] sm:$0x3]  ;;  %s800_s26 = scalar_lea.vmem %s799_s16, 256  ;;  %p801_p11 = scmp.lt.s32.totalorder %s1159_s6, %s799_s16 }
  0x62   : > { %640 = vmatpush1.bf16.msra.mxu0 %v639_v14  ;;  %v316_v31 = vrot.slane %v311_v29, %v315_v28  ;;  %v320_v32 = vrot.slane %v311_v29, %v319_v30  ;;  %p797_p12 = pneg %p796_p8  ;;  %p802_p0 = scmp.lt.s32.totalorder %s800_s26, %s794_s14 }
  0x63   : > { %642 = vmatprep.subr.bf16.mxu0 %v641_v15 }
  0x64   : > { %p803_p5 = por %p802_p0, %p801_p11 }
  0x66   : > { %644 = vmatpush1.bf16.msra.mxu0 %v643_v20  ;;  %p804_p9 = pnand %p803_p5, %p797_p12 }
  0x67   : > { %646 = vmatprep.subr.bf16.mxu0 %v645_v21 }
  0x6a   : > { %648 = vmatpush1.bf16.msra.mxu0 %v647_v24 }
  0x6d   : > { %624 = vmatmul.mubr.msk.f32.vlgmr.msra.gmra.mrb[0].mxu0 %vm323_vm0, %v294_v25 }
 0x140   : > { %v393_v33 = vpop.f32.mrb[0].mxu0 }
 0x141   : > { %v394_v34 = vadd.f32 %v393_v33, %v316_v31  ;;  %v395_v35 = vpop.f32.mrb[1].mxu0 }
 0x142   : > { %v396_v36 = vadd.f32 %v395_v35, %v320_v32 }
 0x143   : > { %400 = vrot.lane.b32.xlu0 %v394_v34, %s947_s12  ;;  %398 = vst.msk [vmem:[%s279_s8] sm:$0xff] %vm323_vm0, %v394_v34 }
 0x144   : > { %807 = shalt.err (!%p804_p9)
}
 0x145   : > { %s808_s25 = scalar_lea.hbm %s1157_s29, 128  ;;  %s812_s9 = scalar_lea.hbm %s1279_s3, 256 }
 0x146   : > { %p809_p1 = scmp.ne.s32.totalorder %s1157_s29, %s808_s25  ;;  %p813_p3 = scmp.lt.u32.totalorder %s1157_s29, %s1279_s3 }
 0x147   : > { %p814_p13 = scmp.lt.u32.totalorder %s812_s9, %s808_s25  ;;  %p816_p6 = scmp.lt.u32.totalorder %s808_s25, %s1157_s29 }
 0x148   : > { %p810_p2 = pnand %p809_p1, %p1075_p10 }
 0x149   : > { %p815_p4 = por %p814_p13, %p813_p3 }
 0x14a   : > { %p811_p7 = pneg %p810_p2 }
 0x14b   : > { %p817_p8 = por %p816_p6, %p815_p4 }
 0x14d   : > { %p818_p12 = pnand %p817_p8, %p811_p7 }
 0x14f   : > { %821 = shalt.err (!%p818_p12)
}
 0x150   : > { %655 = dma.vmem_to_hbm [thread:$0]  (%p1075_p10), %s1159_s6, 128, %s1157_s29, %s406_s21  }
 0x151   : > { %s293_s14 = scalar_lea.vmem [#allocation10], %s1131_s15  ;;  %s410_s10 = sand.u32 1, %s1012_s24  }
 0x152   : > { %404 = vst.msk [vmem:[%s293_s14] sm:$0xff] %vm323_vm0, %v396_v36  ;;  %s286_s16 = scalar_lea.vmem [#allocation8], %s1131_s15  ;;  %s458_s25 = sshll.u32 %s293_s14, 4  ;;  %s1202_s25 = int_to_ptr.vmem [resolvable:$true] %s458_s25 }
 0x153   : > { %s444_s26 = sshll.u32 %s286_s16, 4  ;;  %s1192_s9 = scalar_lea.hbm %s1280_s4, %s1150_s17  ;;  %s1194_s26 = int_to_ptr.vmem [resolvable:$true] %s444_s26 }
 0x154   : > { %s1200_s21 = scalar_lea.hbm %s1281_s5, %s1150_s17  ;;  %s1205_s24 = scalar_lea.sflag [#allocation9], %s410_s10 }
 0x155   : > { %s822_s15 = scalar_lea.vmem %s1194_s26, 128  ;;  %s949_s30 = smov [#allocation8]  }
 0x156   : > { %p823_p11 = scmp.ne.s32.totalorder %s1194_s26, %s822_s15  ;;  %s826_s12 = sshll.u32 %s949_s30, 4  ;;  %s827_s12 = int_to_ptr.vmem [resolvable:$false] %s826_s12 }
 0x157   : > { %s828_s14 = scalar_lea.vmem %s827_s12, 256  ;;  %p829_p9 = scmp.lt.s32.totalorder %s1194_s26, %s827_s12 }
 0x158   : > { %p824_p0 = pnand %p823_p11, %p1075_p10  ;;  %p830_p1 = scmp.lt.s32.totalorder %s828_s14, %s822_s15 }
 0x15a   : > { %p825_p5 = pneg %p824_p0  ;;  %p831_p2 = por %p830_p1, %p829_p9 }
 0x15c   : > { %p832_p7 = pnand %p831_p2, %p825_p5 }
 0x1b5   : > { %v401_v37 = vpop.permute.xlu0 %400 }
 0x1b6   : > { %403 = vst.msk [vmem:[%s286_s16] sm:$0xff] %vm323_vm0, %v401_v37 }
 0x1b7   : > { %835 = shalt.err (!%p832_p7)
}
 0x1b8   : > { %s836_s17 = scalar_lea.hbm %s1192_s9, 128  ;;  %s840_s28 = scalar_lea.hbm %s1280_s4, 256 }
 0x1b9   : > { %p837_p3 = scmp.ne.s32.totalorder %s1192_s9, %s836_s17  ;;  %p841_p6 = scmp.lt.u32.totalorder %s1192_s9, %s1280_s4 }
 0x1ba   : > { %p842_p8 = scmp.lt.u32.totalorder %s840_s28, %s836_s17  ;;  %p844_p11 = scmp.lt.u32.totalorder %s836_s17, %s1192_s9 }
 0x1bb   : > { %p838_p13 = pnand %p837_p3, %p1075_p10 }
 0x1bc   : > { %p843_p12 = por %p842_p8, %p841_p6 }
 0x1bd   : > { %p839_p4 = pneg %p838_p13 }
 0x1be   : > { %p845_p0 = por %p844_p11, %p843_p12 }
 0x1c0   : > { %p846_p5 = pnand %p845_p0, %p839_p4 }
 0x1c2   : > { %849 = shalt.err (!%p846_p5)
}
 0x1c3   : > { %656 = dma.vmem_to_hbm [thread:$0]  (%p1075_p10), %s1194_s26, 128, %s1192_s9, %s1205_s24  }
 0x1c4   : > { %s850_s29 = scalar_lea.vmem %s1202_s25, 128  ;;  %s950_s15 = smov [#allocation10]  }
 0x1c5   : > { %p851_p9 = scmp.ne.s32.totalorder %s1202_s25, %s850_s29  ;;  %s854_s30 = sshll.u32 %s950_s15, 4  ;;  %s855_s30 = int_to_ptr.vmem [resolvable:$false] %s854_s30 }
 0x1c6   : > { %s856_s12 = scalar_lea.vmem %s855_s30, 256  ;;  %p857_p7 = scmp.lt.s32.totalorder %s1202_s25, %s855_s30 }
 0x1c7   : > { %p852_p1 = pnand %p851_p9, %p1075_p10  ;;  %p858_p3 = scmp.lt.s32.totalorder %s856_s12, %s850_s29 }
 0x1c9   : > { %p853_p2 = pneg %p852_p1  ;;  %p859_p13 = por %p858_p3, %p857_p7 }
 0x1cb   : > { %p860_p4 = pnand %p859_p13, %p853_p2 }
 0x1cd   : > { %863 = shalt.err (!%p860_p4)
}
 0x1ce   : > { %s864_s26 = scalar_lea.hbm %s1200_s21, 128  ;;  %s868_s17 = scalar_lea.hbm %s1281_s5, 256 }
 0x1cf   : > { %p865_p6 = scmp.ne.s32.totalorder %s1200_s21, %s864_s26  ;;  %p869_p11 = scmp.lt.u32.totalorder %s1200_s21, %s1281_s5 }
 0x1d0   : > { %p870_p0 = scmp.lt.u32.totalorder %s868_s17, %s864_s26  ;;  %p872_p9 = scmp.lt.u32.totalorder %s864_s26, %s1200_s21 }
 0x1d1   : > { %p866_p8 = pnand %p865_p6, %p1075_p10 }
 0x1d2   : > { %p871_p5 = por %p870_p0, %p869_p11 }
 0x1d3   : > { %p867_p12 = pneg %p866_p8 }
 0x1d4   : > { %p873_p1 = por %p872_p9, %p871_p5 }
 0x1d6   : > { %p874_p2 = pnand %p873_p1, %p867_p12 }
 0x1d8   : > { %877 = shalt.err (!%p874_p2)
}
 0x1d9   : > { %657 = dma.vmem_to_hbm [thread:$0]  (%p1075_p10), %s1202_s25, 128, %s1200_s21, %s1205_s24  }
 0x1da PF: > { %s470_s28 = sand.u32 1, %s920_s18   ;;  %p1298_p7 = scmp.ne.s32.totalorder %s1287_s27, 0 }
 0x1db   : > { %p1299_p3 = scmp.ge.s32.totalorder %s940_s23, 2  ;;  %s471_s8 = scalar_lea.sflag [#allocation4], %s470_s28 }
 0x1dd   : > { %p670_p13 = pnand %p1299_p3, %p1298_p7 }
 0x1df   : > { %911 = dma.done.wait (!%p670_p13), %s471_s8, 128  }
 0x1e0   : > { %913 = vsyncadd (!%p670_p13), %s471_s8, 4294967168  ;;  %s1300_s6 = sadd.s32 4294967294, %s940_s23  }
 0x1e1   : > { %s479_s29 = sand.u32 1, %s1300_s6  }
 0x1e2   : > { %s480_s15 = scalar_lea.sflag [#allocation9], %s479_s29 }
 0x1e3   : > { %915 = dma.done.wait (!%p670_p13), %s480_s15, 256  }
 0x1e4   : > { %917 = vsyncadd (!%p670_p13), %s480_s15, 4294967040  ;;  %s26_s23 = sadd.s32 1, %s940_s23   ;;  %s1301_s18 = smov %s924_s19 }
 0x1e5   : > { %p23_p10 = scmp.ge.s32.totalorder %s26_s23, 4   ;;  %s1302_s19 = smov %s928_s20 }
 0x1e6   : > { %s1303_s20 = smov %s1084_s13  ;;  %s1304_s21 = smov %s936_s22 }
 0x1e7   : > { %s1305_s22 = smov %s1307_s7  ;;  %25 = sbr.rel (!%p23_p10) target bundleno = 9 (0x9), region = 113 }
 0x1ee   :  { %494 = vsyncpa [#allocation3], 1 }
 0x1ef   :  { %496 = vsyncpa [#allocation3 + $0x1], 1 }
 0x1f0   :  { %497 = vsyncpa [#allocation6], 1 }
 0x1f1   :  { %498 = vsyncpa [#allocation4], 1 }
 0x1f2   :  { %500 = vsyncpa [#allocation4 + $0x1], 1 }
 0x1f3   :  { %501 = vsyncpa [#allocation9], 1 }
 0x1f4   :  { %503 = vsyncpa [#allocation9 + $0x1], 1 }

</bundles_post_ra>
